<compile_context>
chip_gen: v6e
topology: v6e:2x2x1
jax: 0.10.0
libtpu: 0.0.40
codegen_flags: <defaults>
</compile_context>

<pallas_src>
import functools

import jax
import jax.numpy as jnp
from jax.experimental import pallas as pl
from jax.experimental.pallas import tpu as pltpu

LANES = 128          # points per row (lane axis)
MAX_TILE_R = 2048    # rows of 128 points per grid step (~8 MiB double-buffered)


def _round_up(x: int, m: int) -> int:
    return ((x + m - 1) // m) * m


def sdf_box_kernel(hs_ref, p_ref, out_ref):
    # hs_ref : (3,)              f32 in SMEM  (the nn.Parameter `halfsides`)
    # p_ref  : (3, TILE_R, 128)  f32 in VMEM  (x / y / z planes of points)
    # out_ref: (TILE_R, 128)     f32 in VMEM
    hx = hs_ref[0]
    hy = hs_ref[1]
    hz = hs_ref[2]

    # Dense (TILE_R, 128) slabs per coordinate -> full-vreg VPU work.
    qx = jnp.abs(p_ref[0]) - hx
    qy = jnp.abs(p_ref[1]) - hy
    qz = jnp.abs(p_ref[2]) - hz

    # max over the coordinate axis (keepdim) == elementwise max of the 3 planes
    q_max = jnp.maximum(jnp.maximum(qx, qy), qz)

    # q.where(q > 0, 0) == max(q, 0); the norm over the coord axis is elementwise.
    rx = jnp.maximum(qx, 0.0)
    ry = jnp.maximum(qy, 0.0)
    rz = jnp.maximum(qz, 0.0)
    outside = jnp.sqrt(rx * rx + ry * ry + rz * rz)   # sqrt lands on the EUP slot

    # q_max.where(q_max < 0, 0) == min(q_max, 0)
    inside = jnp.minimum(q_max, 0.0)

    out_ref[...] = outside + inside


def sdf_box(query_positions: jax.Array, halfsides: jax.Array,
            *, max_tile_r: int = MAX_TILE_R) -> jax.Array:
    """Pallas-backed SDFBox.forward. query_positions: (..., 3) -> (..., 1)."""
    *lead, d = query_positions.shape
    assert d == 3, "last dim must be 3"
    assert max_tile_r % 8 == 0, "max_tile_r must be sublane-aligned"
    n = 1
    for s in lead:
        n *= s

    if n == 0:  # empty input: grid=(0,) may not lower; short-circuit.
        return jnp.zeros((*lead, 1), dtype=jnp.float32)

    # ---- choose tiling --------------------------------------------------
    r = pl.cdiv(n, LANES)            # rows of 128 points
    r_pad = _round_up(r, 8)          # sublane alignment only (<= 1023 pts pad)
    n_pad = r_pad * LANES
    tile_r = min(max_tile_r, r_pad)  # big, sublane-aligned tile
    num_steps = pl.cdiv(r_pad, tile_r)   # grid need not divide r_pad:
                                         # Pallas masks the boundary block.

    # ---- relayout: (n, 3) -> (3, r_pad, 128) ----------------------------
    pts = query_positions.reshape(n, 3).astype(jnp.float32)
    if n_pad != n:
        pts = jnp.pad(pts, ((0, n_pad - n), (0, 0)))
    # Transpose only small (128, 3) minor tiles, not one giant (N, 3) matrix.
    p3 = jnp.transpose(pts.reshape(r_pad, LANES, 3), (2, 0, 1))  # (3, r_pad, 128)

    out = pl.pallas_call(
        sdf_box_kernel,
        out_shape=jax.ShapeDtypeStruct((r_pad, LANES), jnp.float32),
        grid=(num_steps,),
        in_specs=[
            pl.BlockSpec(memory_space=pltpu.MemorySpace.SMEM),      # halfsides (3,)
            pl.BlockSpec((3, tile_r, LANES), lambda i: (0, i, 0)),  # points
        ],
        out_specs=pl.BlockSpec((tile_r, LANES), lambda i: (i, 0)),
        compiler_params=pltpu.CompilerParams(
            dimension_semantics=("parallel",)),
    )(halfsides.astype(jnp.float32), p3)

    return out.reshape(n_pad)[:n].reshape(*lead, 1)


def sdf_box_reference(query_positions, halfsides):
    """Pure-JAX reference mirroring the PyTorch forward."""
    q = jnp.abs(query_positions) - halfsides
    q_max = jnp.max(q, axis=-1, keepdims=True)
    outside = jnp.linalg.norm(jnp.where(q > 0.0, q, 0.0), axis=-1, keepdims=True)
    return outside + jnp.where(q_max < 0.0, q_max, 0.0)


if __name__ == "__main__":
    # Deterministic "parameter" init (matches nn.Parameter(torch.tensor(halfsides)))
    halfsides = jnp.array([0.5, 1.0, 1.5], dtype=jnp.float32)

    # Jit the whole wrapper so pad / reshape / transpose / slice fuse with the
    # pallas_call into one XLA program.
    sdf_box_jit = jax.jit(sdf_box)

    key = jax.random.PRNGKey(0)

    # 1) Small shape consistent with the module: arbitrary leading dims, last dim = 3.
    x = 2.0 * jax.random.normal(key, (2, 128, 3), dtype=jnp.float32)
    out = jax.block_until_ready(sdf_box_jit(x, halfsides))
    ref = sdf_box_reference(x, halfsides)
    assert out.shape == (2, 128, 1)
    assert jnp.allclose(out, ref, atol=1e-5, rtol=1e-5)

    # 2) Non-multiple-of-128 point count exercises the padding path.
    key2 = jax.random.PRNGKey(1)
    x2 = 2.0 * jax.random.normal(key2, (3, 5, 7, 3), dtype=jnp.float32)
    out2 = jax.block_until_ready(sdf_box_jit(x2, halfsides))
    ref2 = sdf_box_reference(x2, halfsides)
    assert out2.shape == (3, 5, 7, 1)
    assert jnp.allclose(out2, ref2, atol=1e-5, rtol=1e-5)

    # 3) Multi-step grid with a masked boundary block (non-divisible grid path),
    #    exercised at a small size by shrinking the tile.
    key3 = jax.random.PRNGKey(2)
    x3 = 2.0 * jax.random.normal(key3, (1, 3000, 3), dtype=jnp.float32)
    sdf_box_small_tile = jax.jit(functools.partial(sdf_box, max_tile_r=16))
    out3 = jax.block_until_ready(sdf_box_small_tile(x3, halfsides))
    ref3 = sdf_box_reference(x3, halfsides)
    assert out3.shape == (1, 3000, 1)
    assert jnp.allclose(out3, ref3, atol=1e-5, rtol=1e-5)

    print("KERNEL_OK")
</pallas_src>

<mosaic_0001>
module attributes {stable_mosaic.version = 11 : i64} {
  func.func @sdf_box_kernel(%arg0: i32, %arg1: memref<3xf32, #tpu.memory_space<smem>>, %arg2: memref<3x8x128xf32, #tpu.memory_space<vmem>>, %arg3: memref<8x128xf32, #tpu.memory_space<vmem>>) attributes {dimension_semantics = [#tpu.dimension_semantics<parallel>], iteration_bounds = array<i64: 1>, scalar_prefetch = 0 : i64, scratch_operands = 0 : i64, tpu.core_type = #tpu.core_type<tc>, window_params = [{transform_indices = @transform_0, window_bounds = array<i64: 3>}, {transform_indices = @transform_1, window_bounds = array<i64: 3, 8, 128>}, {transform_indices = @transform_2, window_bounds = array<i64: 8, 128>}]} {
    %c0 = arith.constant 0 : index
    %0 = memref.load %arg1[%c0] : memref<3xf32, #tpu.memory_space<smem>>
    %c1 = arith.constant 1 : index
    %1 = memref.load %arg1[%c1] : memref<3xf32, #tpu.memory_space<smem>>
    %c2 = arith.constant 2 : index
    %2 = memref.load %arg1[%c2] : memref<3xf32, #tpu.memory_space<smem>>
    %c0_0 = arith.constant 0 : index
    %c0_1 = arith.constant 0 : index
    %c0_2 = arith.constant 0 : index
    %3 = vector.load %arg2[%c0_0, %c0_1, %c0_2] : memref<3x8x128xf32, #tpu.memory_space<vmem>>, vector<1x8x128xf32>
    %4 = vector.shape_cast %3 : vector<1x8x128xf32> to vector<8x128xf32>
    %5 = math.absf %4 : vector<8x128xf32>
    %6 = vector.broadcast %0 : f32 to vector<8x128xf32>
    %7 = arith.subf %5, %6 : vector<8x128xf32>
    %c1_3 = arith.constant 1 : index
    %c0_4 = arith.constant 0 : index
    %c0_5 = arith.constant 0 : index
    %8 = vector.load %arg2[%c1_3, %c0_4, %c0_5] : memref<3x8x128xf32, #tpu.memory_space<vmem>>, vector<1x8x128xf32>
    %9 = vector.shape_cast %8 : vector<1x8x128xf32> to vector<8x128xf32>
    %10 = math.absf %9 : vector<8x128xf32>
    %11 = vector.broadcast %1 : f32 to vector<8x128xf32>
    %12 = arith.subf %10, %11 : vector<8x128xf32>
    %c2_6 = arith.constant 2 : index
    %c0_7 = arith.constant 0 : index
    %c0_8 = arith.constant 0 : index
    %13 = vector.load %arg2[%c2_6, %c0_7, %c0_8] : memref<3x8x128xf32, #tpu.memory_space<vmem>>, vector<1x8x128xf32>
    %14 = vector.shape_cast %13 : vector<1x8x128xf32> to vector<8x128xf32>
    %15 = math.absf %14 : vector<8x128xf32>
    %16 = vector.broadcast %2 : f32 to vector<8x128xf32>
    %17 = arith.subf %15, %16 : vector<8x128xf32>
    %18 = arith.maximumf %7, %12 : vector<8x128xf32>
    %19 = arith.maximumf %18, %17 : vector<8x128xf32>
    %cst = arith.constant 0.000000e+00 : f32
    %20 = vector.broadcast %cst : f32 to vector<8x128xf32>
    %21 = arith.maximumf %7, %20 : vector<8x128xf32>
    %cst_9 = arith.constant 0.000000e+00 : f32
    %22 = vector.broadcast %cst_9 : f32 to vector<8x128xf32>
    %23 = arith.maximumf %12, %22 : vector<8x128xf32>
    %cst_10 = arith.constant 0.000000e+00 : f32
    %24 = vector.broadcast %cst_10 : f32 to vector<8x128xf32>
    %25 = arith.maximumf %17, %24 : vector<8x128xf32>
    %26 = arith.mulf %21, %21 : vector<8x128xf32>
    %27 = arith.mulf %23, %23 : vector<8x128xf32>
    %28 = arith.addf %26, %27 : vector<8x128xf32>
    %29 = arith.mulf %25, %25 : vector<8x128xf32>
    %30 = arith.addf %28, %29 : vector<8x128xf32>
    %31 = math.sqrt %30 : vector<8x128xf32>
    %cst_11 = arith.constant 0.000000e+00 : f32
    %32 = vector.broadcast %cst_11 : f32 to vector<8x128xf32>
    %33 = arith.minimumf %19, %32 : vector<8x128xf32>
    %34 = arith.addf %31, %33 : vector<8x128xf32>
    %c0_12 = arith.constant 0 : index
    %c0_13 = arith.constant 0 : index
    %35 = vector.load %arg3[%c0_12, %c0_13] : memref<8x128xf32, #tpu.memory_space<vmem>>, vector<8x128xf32>
    tpu.vector_store %arg3[%c0_12, %c0_13], %34 {strides = array<i32>} : memref<8x128xf32, #tpu.memory_space<vmem>>, vector<8x128xf32>,
    return
  }
  func.func @transform_0(%arg0: i32) -> i32 {
    %c0_i32 = arith.constant 0 : i32
    %c0_i32_0 = arith.constant 0 : i32
    return %c0_i32 : i32
  }
  func.func @transform_1(%arg0: i32) -> (i32, i32, i32) {
    %c0_i32 = arith.constant 0 : i32
    %c0_i32_0 = arith.constant 0 : i32
    %c0_i32_1 = arith.constant 0 : i32
    return %c0_i32, %arg0, %c0_i32_0 : i32, i32, i32
  }
  func.func @transform_2(%arg0: i32) -> (i32, i32) {
    %c0_i32 = arith.constant 0 : i32
    %c0_i32_0 = arith.constant 0 : i32
    return %arg0, %c0_i32 : i32, i32
  }
}

</mosaic_0001>

<bundles_post_ra>
// kernel: sdf_box.1
= control target key start
LH: loop header
LB: loop body
LE: loop exit
PB: predicated region body
PF: predicated region fallthrough
CT: control target
= control target key end

     0   :  { %7 = vsyncpa [#allocation3], 0  ;;  %s118_s0 = inlined_call_operand.vmem [shape: f32[3], index: 0, kind: input, shape index: {}]   ;;  %s119_s1 = inlined_call_operand.vmem [shape: f32[3,8,128], index: 1, kind: input, shape index: {}]   ;;  %s120_s2 = inlined_call_operand.vmem [shape: f32[8,128], index: 2, kind: output, shape index: {}]  }
   0x1   :  { %s14_s11 = sshll.u32 %s118_s0, 4  ;;  %s15_s11 = int_to_ptr.vmem [resolvable:$true] %s14_s11 }
   0x2   :  { %s73_s12 = scalar_lea.vmem %s15_s11, 16  ;;  %p78_p1 = scmp.lt.s32.totalorder %s15_s11, %s15_s11 }
   0x3   :  { %p74_p0 = scmp.ne.s32.totalorder %s15_s11, %s73_s12  ;;  %p79_p2 = scmp.lt.s32.totalorder %s73_s12, %s73_s12 }
   0x5   :  { %p80_p3 = por %p79_p2, %p78_p1 }
   0x7   :  { %p81_p4 = pnand %p80_p3, %p74_p0 }
   0x9   :  { %84 = shalt.err (!%p81_p4)
}
   0xa   :  { %s87_s13 = smov [#allocation2]  }
   0xb   :  { %17 = dma.vmem_to_smem %s15_s11, 16, %s87_s13, [#allocation3]  }
   0xc   :  { %85 = dma.done.wait [#allocation3], 16  }
   0xd   :  { %86 = vsyncadd [#allocation3], 4294967280 }
   0xe   :  { %23 = sfence }
   0xf   :  { %s24_s14 = sld [smem:[#allocation2]]  ;;  %v27_v0 = vld [vmem:[%s119_s1] sm:$0xff]  ;;  %v68_v1 = vld [vmem:[%s119_s1 + $0x8] sm:$0xff]  ;;  %v69_v2 = vld [vmem:[%s119_s1 + $0x10] sm:$0xff] }
  0x10   :  { %s66_s17 = sld [smem:[#allocation2 + $0x1]]  ;;  %v28_v3 = vand.u32 2147483647, %v27_v0  ;;  %v33_v4 = vand.u32 2147483647, %v68_v1 }
  0x11   :  { %s67_s19 = sld [smem:[#allocation2 + $0x2]]  ;;  %v38_v5 = vand.u32 2147483647, %v69_v2 }
  0x15   :  { %v29_v6 = vstv %s24_s14 }
  0x16   :  { %v30_v7 = vsub.f32 %v28_v3, %v29_v6  ;;  %v34_v8 = vstv %s66_s17 }
  0x17   :  { %v35_v9 = vsub.f32 %v33_v4, %v34_v8  ;;  %v39_v10 = vstv %s67_s19 }
  0x18   :  { %v40_v11 = vsub.f32 %v38_v5, %v39_v10  ;;  %v43_v12 = vmax.f32 %v30_v7, 0.0 }
  0x19   :  { %v44_v13 = vmax.f32 %v35_v9, 0.0  ;;  %v41_v20 = vmax.f32 %v30_v7, %v35_v9 }
  0x1a   :  { %v45_v14 = vmax.f32 %v40_v11, 0.0  ;;  %v46_v15 = vmul.f32 %v43_v12, %v43_v12 }
  0x1b   :  { %v47_v16 = vmul.f32 %v44_v13, %v44_v13  ;;  %v42_v21 = vmax.f32 %v41_v20, %v40_v11 }
  0x1c   :  { %v49_v17 = vmul.f32 %v45_v14, %v45_v14 }
  0x1d   :  { %v48_v18 = vadd.f32 %v47_v16, %v46_v15  ;;  %v58_v25 = vmin.f32 %v42_v21, 0.0 }
  0x1f   :  { %v50_v19 = vadd.f32 %v49_v17, %v48_v18 }
  0x21   :  { %71 = vrsqrt.f32 %v50_v19  ;;  %vm53_vm0 = vcmp.eq.f32.partialorder %v50_v19, inf  ;;  %v56_v23 = vand.u32 2147483648, %v50_v19  ;;  %vm55_vm1 = vcmp.eq.f32.partialorder %v50_v19, 0.0 }
  0x2e   :  { %v72_v22 = vpop.eup %71 }
  0x2f   :  { %v52_v24 = vmul.f32 %v72_v22, %v50_v19 }
  0x31   :  { %v54_v26 = vsel %vm53_vm0, %v50_v19, %v52_v24 }
  0x32   :  { %v57_v27 = vsel %vm55_vm1, %v56_v23, %v54_v26 }
  0x33   :  { %v59_v28 = vadd.f32 %v58_v25, %v57_v27 }
  0x35   :  { %60 = vst [vmem:[%s120_s2] sm:$0xff] %v59_v28 }
  0x36   :  { %65 = vsyncpa [#allocation3], 1 }

</bundles_post_ra>
